<compile_context>
chip_gen: v7x
topology: tpu7x:2x2x1
jax: 0.10.0
libtpu: 0.0.40
codegen_flags: <defaults>
</compile_context>

<pallas_src>
import functools

import jax
import jax.numpy as jnp
from jax import lax
from jax.experimental import pallas as pl
from jax.experimental.pallas import tpu as pltpu

EPS = 1e-5
_GELU_C0 = 0.7978845608028654
_GELU_C1 = 0.044715


def _gelu_chain(v2):
    """Exact elementwise chain from the PyTorch module (tanh-approx GELU)."""
    v3 = v2 * 0.5
    v6 = (v2 * v2) * v2 * _GELU_C1
    v8 = (v2 + v6) * _GELU_C0
    return v3 * (jnp.tanh(v8) + 1.0)


def fused_conv_bn_gelu_kernel(x_ref, w_ref, gamma_ref, beta_ref,
                              out_ref, bval_ref, y_ref, *,
                              n_batch, cin, cout, hw, hw_pad, hpwp):
    """Fused 1x1-conv + BatchNorm(training) + tanh-GELU on the interior.

    x_ref:     (N, Cin,  hw_pad) VMEM -- interior input planes, lane-aligned
    w_ref:     (Cout*Cin,)       SMEM -- flattened 1x1 conv weights (scalars)
    gamma_ref: (1, Cout, 1)      VMEM
    beta_ref:  (1, Cout, 1)      VMEM
    out_ref:   (N, Cout, hw_pad) VMEM -- GELU(BN(conv(x))) on the interior
    bval_ref:  (1, Cout, 1)      VMEM -- per-channel border value gelu(shift_c)
    y_ref:     (N, Cout, hw_pad) VMEM scratch -- conv output
    """
    # ---- 1x1 conv as VPU FMAs; inverted loop: each x row loaded once ------
    for n in range(n_batch):
        xrows = [x_ref[n, k:k + 1, :] for k in range(cin)]       # (1, hw_pad)
        for c in range(cout):
            acc = w_ref[c * cin + 0] * xrows[0]
            for k in range(1, cin):
                acc = acc + w_ref[c * cin + k] * xrows[k]
            y_ref[n, c:c + 1, :] = acc

    y = y_ref[...]                                    # (N, Cout, hw_pad) dense

    # ---- BatchNorm batch statistics (per channel) --------------------------
    # Real pixel count per channel includes the conv border (which is exactly
    # zero for a 1x1 kernel with padding=1 and no bias).
    inv_count = 1.0 / float(n_batch * hpwp)

    s_rows = jnp.sum(y, axis=2, keepdims=True)                # (N, Cout, 1)
    s = s_rows[0:1]
    for n in range(1, n_batch):
        s = s + s_rows[n:n + 1]
    mean = s * inv_count                                      # (1, Cout, 1)

    d = y - mean
    q_rows = jnp.sum(d * d, axis=2, keepdims=True)            # (N, Cout, 1)
    q = q_rows[0:1]
    for n in range(1, n_batch):
        q = q + q_rows[n:n + 1]

    # Centered-variance corrections:
    #  + border pixels (conv output 0, not in the block): each adds mean^2
    #  - lane-pad zeros inside the block (not real pixels): each added mean^2
    n_border = float(n_batch * (hpwp - hw))
    n_lanepad = float(n_batch * (hw_pad - hw))
    var = (q + (n_border - n_lanepad) * (mean * mean)) * inv_count

    scale = gamma_ref[...] * lax.rsqrt(var + EPS)             # (1, Cout, 1)
    shift = beta_ref[...] - mean * scale                      # (1, Cout, 1)

    # ---- BN affine + GELU chain, dense over the whole block ---------------
    out_ref[...] = _gelu_chain(y * scale + shift)
    # Border pixels: conv output is 0 there -> BN gives shift_c -> gelu(shift_c).
    bval_ref[...] = _gelu_chain(shift)


def _round_up(x, m):
    return (x + m - 1) // m * m


@jax.jit
def model_forward(x_nchw, conv_w, bn_gamma, bn_beta):
    """x_nchw: (N, 3, H, W) float32.  Returns (N, 4, H+2, W+2) float32."""
    N, Cin, H, W = x_nchw.shape
    Cout = conv_w.shape[0]
    Hp, Wp = H + 2, W + 2
    HW = H * W
    HW_pad = _round_up(HW, 128)        # 128-aligned lane dim

    # NCHW -> (N, Cin, H*W) is a free reshape (no transpose).  Only pad the
    # lane dim if H*W is not a multiple of 128 (for 16x16 it already is).
    x_rows = x_nchw.reshape(N, Cin, HW).astype(jnp.float32)
    if HW_pad != HW:
        x_rows = jnp.pad(x_rows, ((0, 0), (0, 0), (0, HW_pad - HW)))

    w_flat = conv_w[:, :, 0, 0].reshape(Cout * Cin).astype(jnp.float32)
    gamma = bn_gamma.reshape(1, Cout, 1).astype(jnp.float32)
    beta = bn_beta.reshape(1, Cout, 1).astype(jnp.float32)

    kernel = functools.partial(
        fused_conv_bn_gelu_kernel,
        n_batch=N, cin=Cin, cout=Cout, hw=HW, hw_pad=HW_pad, hpwp=Hp * Wp)

    interior, bvals = pl.pallas_call(
        kernel,
        out_shape=(jax.ShapeDtypeStruct((N, Cout, HW_pad), jnp.float32),
                   jax.ShapeDtypeStruct((1, Cout, 1), jnp.float32)),
        in_specs=[
            pl.BlockSpec(memory_space=pltpu.MemorySpace.VMEM),   # x rows
            pl.BlockSpec(memory_space=pltpu.MemorySpace.SMEM),   # conv weights
            pl.BlockSpec(memory_space=pltpu.MemorySpace.VMEM),   # gamma
            pl.BlockSpec(memory_space=pltpu.MemorySpace.VMEM),   # beta
        ],
        out_specs=(pl.BlockSpec(memory_space=pltpu.MemorySpace.VMEM),
                   pl.BlockSpec(memory_space=pltpu.MemorySpace.VMEM)),
        scratch_shapes=[pltpu.VMEM((N, Cout, HW_pad), jnp.float32)],
    )(x_rows, w_flat, gamma, beta)

    # Epilogue: assemble the padded NCHW output.  The interior goes to
    # [1:H+1, 1:W+1]; the +1 border is the per-channel constant gelu(shift_c).
    interior4 = interior[:, :, :HW].reshape(N, Cout, H, W)
    canvas = jnp.broadcast_to(bvals.reshape(1, Cout, 1, 1), (N, Cout, Hp, Wp))
    return lax.dynamic_update_slice(canvas, interior4, (0, 0, 1, 1))


# ---------------------------------------------------------------------------
# Pure-JAX reference (same math, no Pallas) for a sanity check
# ---------------------------------------------------------------------------
def reference_forward(x_nchw, conv_w, bn_gamma, bn_beta):
    xp = jnp.pad(x_nchw, ((0, 0), (0, 0), (1, 1), (1, 1)))
    w = conv_w[:, :, 0, 0]                                   # (Cout, Cin)
    y = jnp.einsum('nchw,oc->nohw', xp, w)
    mean = jnp.mean(y, axis=(0, 2, 3), keepdims=True)
    var = jnp.mean((y - mean) ** 2, axis=(0, 2, 3), keepdims=True)
    g = bn_gamma.reshape(1, -1, 1, 1)
    b = bn_beta.reshape(1, -1, 1, 1)
    v2 = (y - mean) / jnp.sqrt(var + EPS) * g + b
    v11 = (v2 * 0.5) * (jnp.tanh((v2 + v2 * v2 * v2 * _GELU_C1) * _GELU_C0) + 1.0)
    return v11


if __name__ == "__main__":
    key = jax.random.PRNGKey(0)
    k_x, k_w = jax.random.split(key)

    N, Cin, H, W, Cout = 2, 3, 16, 16, 4
    x = jax.random.normal(k_x, (N, Cin, H, W), dtype=jnp.float32)
    conv_w = jax.random.normal(k_w, (Cout, Cin, 1, 1), dtype=jnp.float32) * 0.5
    bn_gamma = 1.0 + 0.1 * jnp.arange(Cout, dtype=jnp.float32)
    bn_beta = 0.05 * jnp.arange(Cout, dtype=jnp.float32)

    out = jax.block_until_ready(model_forward(x, conv_w, bn_gamma, bn_beta))
    ref = jax.block_until_ready(reference_forward(x, conv_w, bn_gamma, bn_beta))

    assert out.shape == (N, Cout, H + 2, W + 2), out.shape
    assert jnp.allclose(out, ref, atol=1e-4, rtol=1e-4), \
        float(jnp.max(jnp.abs(out - ref)))
    print("KERNEL_OK")
</pallas_src>

<mosaic_0001>
module attributes {stable_mosaic.version = 11 : i64} {
  func.func @fused_conv_bn_gelu_kernel(%arg0: memref<2x3x256xf32, #tpu.memory_space<vmem>>, %arg1: memref<12xf32, #tpu.memory_space<smem>>, %arg2: memref<1x4x1xf32, #tpu.memory_space<vmem>>, %arg3: memref<1x4x1xf32, #tpu.memory_space<vmem>>, %arg4: memref<2x4x256xf32, #tpu.memory_space<vmem>>, %arg5: memref<1x4x1xf32, #tpu.memory_space<vmem>>, %arg6: memref<2x4x256xf32, #tpu.memory_space<vmem>>) attributes {dimension_semantics = [], scalar_prefetch = 0 : i64, scratch_operands = 1 : i64, tpu.core_type = #tpu.core_type<tc>} {
    %c0 = arith.constant 0 : index
    %c0_0 = arith.constant 0 : index
    %c0_1 = arith.constant 0 : index
    %0 = vector.load %arg0[%c0, %c0_0, %c0_1] : memref<2x3x256xf32, #tpu.memory_space<vmem>>, vector<1x1x256xf32>
    %1 = vector.shape_cast %0 : vector<1x1x256xf32> to vector<1x256xf32>
    %c0_2 = arith.constant 0 : index
    %c1 = arith.constant 1 : index
    %c0_3 = arith.constant 0 : index
    %2 = vector.load %arg0[%c0_2, %c1, %c0_3] : memref<2x3x256xf32, #tpu.memory_space<vmem>>, vector<1x1x256xf32>
    %3 = vector.shape_cast %2 : vector<1x1x256xf32> to vector<1x256xf32>
    %c0_4 = arith.constant 0 : index
    %c2 = arith.constant 2 : index
    %c0_5 = arith.constant 0 : index
    %4 = vector.load %arg0[%c0_4, %c2, %c0_5] : memref<2x3x256xf32, #tpu.memory_space<vmem>>, vector<1x1x256xf32>
    %5 = vector.shape_cast %4 : vector<1x1x256xf32> to vector<1x256xf32>
    %c0_6 = arith.constant 0 : index
    %6 = memref.load %arg1[%c0_6] : memref<12xf32, #tpu.memory_space<smem>>
    %7 = vector.broadcast %6 : f32 to vector<1x256xf32>
    %8 = arith.mulf %7, %1 : vector<1x256xf32>
    %c1_7 = arith.constant 1 : index
    %9 = memref.load %arg1[%c1_7] : memref<12xf32, #tpu.memory_space<smem>>
    %10 = vector.broadcast %9 : f32 to vector<1x256xf32>
    %11 = arith.mulf %10, %3 : vector<1x256xf32>
    %12 = arith.addf %8, %11 : vector<1x256xf32>
    %c2_8 = arith.constant 2 : index
    %13 = memref.load %arg1[%c2_8] : memref<12xf32, #tpu.memory_space<smem>>
    %14 = vector.broadcast %13 : f32 to vector<1x256xf32>
    %15 = arith.mulf %14, %5 : vector<1x256xf32>
    %16 = arith.addf %12, %15 : vector<1x256xf32>
    %c0_9 = arith.constant 0 : index
    %c0_10 = arith.constant 0 : index
    %c0_11 = arith.constant 0 : index
    %17 = vector.load %arg6[%c0_9, %c0_10, %c0_11] : memref<2x4x256xf32, #tpu.memory_space<vmem>>, vector<1x1x256xf32>
    %18 = vector.shape_cast %17 : vector<1x1x256xf32> to vector<1x256xf32>
    %19 = vector.shape_cast %16 : vector<1x256xf32> to vector<1x1x256xf32>
    tpu.vector_store %arg6[%c0_9, %c0_10, %c0_11], %19 {strides = array<i32>} : memref<2x4x256xf32, #tpu.memory_space<vmem>>, vector<1x1x256xf32>,
    %c3 = arith.constant 3 : index
    %20 = memref.load %arg1[%c3] : memref<12xf32, #tpu.memory_space<smem>>
    %21 = vector.broadcast %20 : f32 to vector<1x256xf32>
    %22 = arith.mulf %21, %1 : vector<1x256xf32>
    %c4 = arith.constant 4 : index
    %23 = memref.load %arg1[%c4] : memref<12xf32, #tpu.memory_space<smem>>
    %24 = vector.broadcast %23 : f32 to vector<1x256xf32>
    %25 = arith.mulf %24, %3 : vector<1x256xf32>
    %26 = arith.addf %22, %25 : vector<1x256xf32>
    %c5 = arith.constant 5 : index
    %27 = memref.load %arg1[%c5] : memref<12xf32, #tpu.memory_space<smem>>
    %28 = vector.broadcast %27 : f32 to vector<1x256xf32>
    %29 = arith.mulf %28, %5 : vector<1x256xf32>
    %30 = arith.addf %26, %29 : vector<1x256xf32>
    %c0_12 = arith.constant 0 : index
    %c1_13 = arith.constant 1 : index
    %c0_14 = arith.constant 0 : index
    %31 = vector.load %arg6[%c0_12, %c1_13, %c0_14] : memref<2x4x256xf32, #tpu.memory_space<vmem>>, vector<1x1x256xf32>
    %32 = vector.shape_cast %31 : vector<1x1x256xf32> to vector<1x256xf32>
    %33 = vector.shape_cast %30 : vector<1x256xf32> to vector<1x1x256xf32>
    tpu.vector_store %arg6[%c0_12, %c1_13, %c0_14], %33 {strides = array<i32>} : memref<2x4x256xf32, #tpu.memory_space<vmem>>, vector<1x1x256xf32>,
    %c6 = arith.constant 6 : index
    %34 = memref.load %arg1[%c6] : memref<12xf32, #tpu.memory_space<smem>>
    %35 = vector.broadcast %34 : f32 to vector<1x256xf32>
    %36 = arith.mulf %35, %1 : vector<1x256xf32>
    %c7 = arith.constant 7 : index
    %37 = memref.load %arg1[%c7] : memref<12xf32, #tpu.memory_space<smem>>
    %38 = vector.broadcast %37 : f32 to vector<1x256xf32>
    %39 = arith.mulf %38, %3 : vector<1x256xf32>
    %40 = arith.addf %36, %39 : vector<1x256xf32>
    %c8 = arith.constant 8 : index
    %41 = memref.load %arg1[%c8] : memref<12xf32, #tpu.memory_space<smem>>
    %42 = vector.broadcast %41 : f32 to vector<1x256xf32>
    %43 = arith.mulf %42, %5 : vector<1x256xf32>
    %44 = arith.addf %40, %43 : vector<1x256xf32>
    %c0_15 = arith.constant 0 : index
    %c2_16 = arith.constant 2 : index
    %c0_17 = arith.constant 0 : index
    %45 = vector.load %arg6[%c0_15, %c2_16, %c0_17] : memref<2x4x256xf32, #tpu.memory_space<vmem>>, vector<1x1x256xf32>
    %46 = vector.shape_cast %45 : vector<1x1x256xf32> to vector<1x256xf32>
    %47 = vector.shape_cast %44 : vector<1x256xf32> to vector<1x1x256xf32>
    tpu.vector_store %arg6[%c0_15, %c2_16, %c0_17], %47 {strides = array<i32>} : memref<2x4x256xf32, #tpu.memory_space<vmem>>, vector<1x1x256xf32>,
    %c9 = arith.constant 9 : index
    %48 = memref.load %arg1[%c9] : memref<12xf32, #tpu.memory_space<smem>>
    %49 = vector.broadcast %48 : f32 to vector<1x256xf32>
    %50 = arith.mulf %49, %1 : vector<1x256xf32>
    %c10 = arith.constant 10 : index
    %51 = memref.load %arg1[%c10] : memref<12xf32, #tpu.memory_space<smem>>
    %52 = vector.broadcast %51 : f32 to vector<1x256xf32>
    %53 = arith.mulf %52, %3 : vector<1x256xf32>
    %54 = arith.addf %50, %53 : vector<1x256xf32>
    %c11 = arith.constant 11 : index
    %55 = memref.load %arg1[%c11] : memref<12xf32, #tpu.memory_space<smem>>
    %56 = vector.broadcast %55 : f32 to vector<1x256xf32>
    %57 = arith.mulf %56, %5 : vector<1x256xf32>
    %58 = arith.addf %54, %57 : vector<1x256xf32>
    %c0_18 = arith.constant 0 : index
    %c3_19 = arith.constant 3 : index
    %c0_20 = arith.constant 0 : index
    %59 = vector.load %arg6[%c0_18, %c3_19, %c0_20] : memref<2x4x256xf32, #tpu.memory_space<vmem>>, vector<1x1x256xf32>
    %60 = vector.shape_cast %59 : vector<1x1x256xf32> to vector<1x256xf32>
    %61 = vector.shape_cast %58 : vector<1x256xf32> to vector<1x1x256xf32>
    tpu.vector_store %arg6[%c0_18, %c3_19, %c0_20], %61 {strides = array<i32>} : memref<2x4x256xf32, #tpu.memory_space<vmem>>, vector<1x1x256xf32>,
    %c1_21 = arith.constant 1 : index
    %c0_22 = arith.constant 0 : index
    %c0_23 = arith.constant 0 : index
    %62 = vector.load %arg0[%c1_21, %c0_22, %c0_23] : memref<2x3x256xf32, #tpu.memory_space<vmem>>, vector<1x1x256xf32>
    %63 = vector.shape_cast %62 : vector<1x1x256xf32> to vector<1x256xf32>
    %c1_24 = arith.constant 1 : index
    %c1_25 = arith.constant 1 : index
    %c0_26 = arith.constant 0 : index
    %64 = vector.load %arg0[%c1_24, %c1_25, %c0_26] : memref<2x3x256xf32, #tpu.memory_space<vmem>>, vector<1x1x256xf32>
    %65 = vector.shape_cast %64 : vector<1x1x256xf32> to vector<1x256xf32>
    %c1_27 = arith.constant 1 : index
    %c2_28 = arith.constant 2 : index
    %c0_29 = arith.constant 0 : index
    %66 = vector.load %arg0[%c1_27, %c2_28, %c0_29] : memref<2x3x256xf32, #tpu.memory_space<vmem>>, vector<1x1x256xf32>
    %67 = vector.shape_cast %66 : vector<1x1x256xf32> to vector<1x256xf32>
    %c0_30 = arith.constant 0 : index
    %68 = memref.load %arg1[%c0_30] : memref<12xf32, #tpu.memory_space<smem>>
    %69 = vector.broadcast %68 : f32 to vector<1x256xf32>
    %70 = arith.mulf %69, %63 : vector<1x256xf32>
    %c1_31 = arith.constant 1 : index
    %71 = memref.load %arg1[%c1_31] : memref<12xf32, #tpu.memory_space<smem>>
    %72 = vector.broadcast %71 : f32 to vector<1x256xf32>
    %73 = arith.mulf %72, %65 : vector<1x256xf32>
    %74 = arith.addf %70, %73 : vector<1x256xf32>
    %c2_32 = arith.constant 2 : index
    %75 = memref.load %arg1[%c2_32] : memref<12xf32, #tpu.memory_space<smem>>
    %76 = vector.broadcast %75 : f32 to vector<1x256xf32>
    %77 = arith.mulf %76, %67 : vector<1x256xf32>
    %78 = arith.addf %74, %77 : vector<1x256xf32>
    %c1_33 = arith.constant 1 : index
    %c0_34 = arith.constant 0 : index
    %c0_35 = arith.constant 0 : index
    %79 = vector.load %arg6[%c1_33, %c0_34, %c0_35] : memref<2x4x256xf32, #tpu.memory_space<vmem>>, vector<1x1x256xf32>
    %80 = vector.shape_cast %79 : vector<1x1x256xf32> to vector<1x256xf32>
    %81 = vector.shape_cast %78 : vector<1x256xf32> to vector<1x1x256xf32>
    tpu.vector_store %arg6[%c1_33, %c0_34, %c0_35], %81 {strides = array<i32>} : memref<2x4x256xf32, #tpu.memory_space<vmem>>, vector<1x1x256xf32>,
    %c3_36 = arith.constant 3 : index
    %82 = memref.load %arg1[%c3_36] : memref<12xf32, #tpu.memory_space<smem>>
    %83 = vector.broadcast %82 : f32 to vector<1x256xf32>
    %84 = arith.mulf %83, %63 : vector<1x256xf32>
    %c4_37 = arith.constant 4 : index
    %85 = memref.load %arg1[%c4_37] : memref<12xf32, #tpu.memory_space<smem>>
    %86 = vector.broadcast %85 : f32 to vector<1x256xf32>
    %87 = arith.mulf %86, %65 : vector<1x256xf32>
    %88 = arith.addf %84, %87 : vector<1x256xf32>
    %c5_38 = arith.constant 5 : index
    %89 = memref.load %arg1[%c5_38] : memref<12xf32, #tpu.memory_space<smem>>
    %90 = vector.broadcast %89 : f32 to vector<1x256xf32>
    %91 = arith.mulf %90, %67 : vector<1x256xf32>
    %92 = arith.addf %88, %91 : vector<1x256xf32>
    %c1_39 = arith.constant 1 : index
    %c1_40 = arith.constant 1 : index
    %c0_41 = arith.constant 0 : index
    %93 = vector.load %arg6[%c1_39, %c1_40, %c0_41] : memref<2x4x256xf32, #tpu.memory_space<vmem>>, vector<1x1x256xf32>
    %94 = vector.shape_cast %93 : vector<1x1x256xf32> to vector<1x256xf32>
    %95 = vector.shape_cast %92 : vector<1x256xf32> to vector<1x1x256xf32>
    tpu.vector_store %arg6[%c1_39, %c1_40, %c0_41], %95 {strides = array<i32>} : memref<2x4x256xf32, #tpu.memory_space<vmem>>, vector<1x1x256xf32>,
    %c6_42 = arith.constant 6 : index
    %96 = memref.load %arg1[%c6_42] : memref<12xf32, #tpu.memory_space<smem>>
    %97 = vector.broadcast %96 : f32 to vector<1x256xf32>
    %98 = arith.mulf %97, %63 : vector<1x256xf32>
    %c7_43 = arith.constant 7 : index
    %99 = memref.load %arg1[%c7_43] : memref<12xf32, #tpu.memory_space<smem>>
    %100 = vector.broadcast %99 : f32 to vector<1x256xf32>
    %101 = arith.mulf %100, %65 : vector<1x256xf32>
    %102 = arith.addf %98, %101 : vector<1x256xf32>
    %c8_44 = arith.constant 8 : index
    %103 = memref.load %arg1[%c8_44] : memref<12xf32, #tpu.memory_space<smem>>
    %104 = vector.broadcast %103 : f32 to vector<1x256xf32>
    %105 = arith.mulf %104, %67 : vector<1x256xf32>
    %106 = arith.addf %102, %105 : vector<1x256xf32>
    %c1_45 = arith.constant 1 : index
    %c2_46 = arith.constant 2 : index
    %c0_47 = arith.constant 0 : index
    %107 = vector.load %arg6[%c1_45, %c2_46, %c0_47] : memref<2x4x256xf32, #tpu.memory_space<vmem>>, vector<1x1x256xf32>
    %108 = vector.shape_cast %107 : vector<1x1x256xf32> to vector<1x256xf32>
    %109 = vector.shape_cast %106 : vector<1x256xf32> to vector<1x1x256xf32>
    tpu.vector_store %arg6[%c1_45, %c2_46, %c0_47], %109 {strides = array<i32>} : memref<2x4x256xf32, #tpu.memory_space<vmem>>, vector<1x1x256xf32>,
    %c9_48 = arith.constant 9 : index
    %110 = memref.load %arg1[%c9_48] : memref<12xf32, #tpu.memory_space<smem>>
    %111 = vector.broadcast %110 : f32 to vector<1x256xf32>
    %112 = arith.mulf %111, %63 : vector<1x256xf32>
    %c10_49 = arith.constant 10 : index
    %113 = memref.load %arg1[%c10_49] : memref<12xf32, #tpu.memory_space<smem>>
    %114 = vector.broadcast %113 : f32 to vector<1x256xf32>
    %115 = arith.mulf %114, %65 : vector<1x256xf32>
    %116 = arith.addf %112, %115 : vector<1x256xf32>
    %c11_50 = arith.constant 11 : index
    %117 = memref.load %arg1[%c11_50] : memref<12xf32, #tpu.memory_space<smem>>
    %118 = vector.broadcast %117 : f32 to vector<1x256xf32>
    %119 = arith.mulf %118, %67 : vector<1x256xf32>
    %120 = arith.addf %116, %119 : vector<1x256xf32>
    %c1_51 = arith.constant 1 : index
    %c3_52 = arith.constant 3 : index
    %c0_53 = arith.constant 0 : index
    %121 = vector.load %arg6[%c1_51, %c3_52, %c0_53] : memref<2x4x256xf32, #tpu.memory_space<vmem>>, vector<1x1x256xf32>
    %122 = vector.shape_cast %121 : vector<1x1x256xf32> to vector<1x256xf32>
    %123 = vector.shape_cast %120 : vector<1x256xf32> to vector<1x1x256xf32>
    tpu.vector_store %arg6[%c1_51, %c3_52, %c0_53], %123 {strides = array<i32>} : memref<2x4x256xf32, #tpu.memory_space<vmem>>, vector<1x1x256xf32>,
    %c0_54 = arith.constant 0 : index
    %c0_55 = arith.constant 0 : index
    %c0_56 = arith.constant 0 : index
    %124 = vector.load %arg6[%c0_54, %c0_55, %c0_56] : memref<2x4x256xf32, #tpu.memory_space<vmem>>, vector<2x4x256xf32>
    %cst = arith.constant dense<0.000000e+00> : vector<2x4xf32>
    %125 = vector.multi_reduction <add>, %124, %cst [2] : vector<2x4x256xf32> to vector<2x4xf32>
    %126 = vector.shape_cast %125 : vector<2x4xf32> to vector<2x4x1xf32>
    %127 = vector.extract_strided_slice %126 {offsets = [0, 0, 0], sizes = [1, 4, 1], strides = [1, 1, 1]} : vector<2x4x1xf32> to vector<1x4x1xf32>
    %128 = vector.extract_strided_slice %126 {offsets = [1, 0, 0], sizes = [1, 4, 1], strides = [1, 1, 1]} : vector<2x4x1xf32> to vector<1x4x1xf32>
    %129 = arith.addf %127, %128 : vector<1x4x1xf32>
    %cst_57 = arith.constant 0.00154320989 : f32
    %130 = vector.broadcast %cst_57 : f32 to vector<1x4x1xf32>
    %131 = arith.mulf %129, %130 : vector<1x4x1xf32>
    %132 = vector.broadcast %131 : vector<1x4x1xf32> to vector<2x4x256xf32>
    %133 = arith.subf %124, %132 : vector<2x4x256xf32>
    %134 = arith.mulf %133, %133 : vector<2x4x256xf32>
    %cst_58 = arith.constant dense<0.000000e+00> : vector<2x4xf32>
    %135 = vector.multi_reduction <add>, %134, %cst_58 [2] : vector<2x4x256xf32> to vector<2x4xf32>
    %136 = vector.shape_cast %135 : vector<2x4xf32> to vector<2x4x1xf32>
    %137 = vector.extract_strided_slice %136 {offsets = [0, 0, 0], sizes = [1, 4, 1], strides = [1, 1, 1]} : vector<2x4x1xf32> to vector<1x4x1xf32>
    %138 = vector.extract_strided_slice %136 {offsets = [1, 0, 0], sizes = [1, 4, 1], strides = [1, 1, 1]} : vector<2x4x1xf32> to vector<1x4x1xf32>
    %139 = arith.addf %137, %138 : vector<1x4x1xf32>
    %140 = arith.mulf %131, %131 : vector<1x4x1xf32>
    %cst_59 = arith.constant 1.360000e+02 : f32
    %141 = vector.broadcast %cst_59 : f32 to vector<1x4x1xf32>
    %142 = arith.mulf %141, %140 : vector<1x4x1xf32>
    %143 = arith.addf %139, %142 : vector<1x4x1xf32>
    %cst_60 = arith.constant 0.00154320989 : f32
    %144 = vector.broadcast %cst_60 : f32 to vector<1x4x1xf32>
    %145 = arith.mulf %143, %144 : vector<1x4x1xf32>
    %c0_61 = arith.constant 0 : index
    %c0_62 = arith.constant 0 : index
    %c0_63 = arith.constant 0 : index
    %146 = vector.load %arg2[%c0_61, %c0_62, %c0_63] : memref<1x4x1xf32, #tpu.memory_space<vmem>>, vector<1x4x1xf32>
    %cst_64 = arith.constant 9.99999974E-6 : f32
    %147 = vector.broadcast %cst_64 : f32 to vector<1x4x1xf32>
    %148 = arith.addf %145, %147 : vector<1x4x1xf32>
    %149 = math.rsqrt %148 : vector<1x4x1xf32>
    %150 = arith.mulf %146, %149 : vector<1x4x1xf32>
    %c0_65 = arith.constant 0 : index
    %c0_66 = arith.constant 0 : index
    %c0_67 = arith.constant 0 : index
    %151 = vector.load %arg3[%c0_65, %c0_66, %c0_67] : memref<1x4x1xf32, #tpu.memory_space<vmem>>, vector<1x4x1xf32>
    %152 = arith.mulf %131, %150 : vector<1x4x1xf32>
    %153 = arith.subf %151, %152 : vector<1x4x1xf32>
    %154 = vector.broadcast %150 : vector<1x4x1xf32> to vector<2x4x256xf32>
    %155 = arith.mulf %124, %154 : vector<2x4x256xf32>
    %156 = vector.broadcast %153 : vector<1x4x1xf32> to vector<2x4x256xf32>
    %157 = arith.addf %155, %156 : vector<2x4x256xf32>
    %cst_68 = arith.constant 5.000000e-01 : f32
    %158 = vector.broadcast %cst_68 : f32 to vector<2x4x256xf32>
    %159 = arith.mulf %157, %158 : vector<2x4x256xf32>
    %160 = arith.mulf %157, %157 : vector<2x4x256xf32>
    %161 = arith.mulf %160, %157 : vector<2x4x256xf32>
    %cst_69 = arith.constant 4.471500e-02 : f32
    %162 = vector.broadcast %cst_69 : f32 to vector<2x4x256xf32>
    %163 = arith.mulf %161, %162 : vector<2x4x256xf32>
    %164 = arith.addf %157, %163 : vector<2x4x256xf32>
    %cst_70 = arith.constant 0.797884583 : f32
    %165 = vector.broadcast %cst_70 : f32 to vector<2x4x256xf32>
    %166 = arith.mulf %164, %165 : vector<2x4x256xf32>
    %167 = math.tanh %166 : vector<2x4x256xf32>
    %cst_71 = arith.constant 1.000000e+00 : f32
    %168 = vector.broadcast %cst_71 : f32 to vector<2x4x256xf32>
    %169 = arith.addf %167, %168 : vector<2x4x256xf32>
    %170 = arith.mulf %159, %169 : vector<2x4x256xf32>
    %c0_72 = arith.constant 0 : index
    %c0_73 = arith.constant 0 : index
    %c0_74 = arith.constant 0 : index
    %171 = vector.load %arg4[%c0_72, %c0_73, %c0_74] : memref<2x4x256xf32, #tpu.memory_space<vmem>>, vector<2x4x256xf32>
    tpu.vector_store %arg4[%c0_72, %c0_73, %c0_74], %170 {strides = array<i32>} : memref<2x4x256xf32, #tpu.memory_space<vmem>>, vector<2x4x256xf32>,
    %cst_75 = arith.constant 5.000000e-01 : f32
    %172 = vector.broadcast %cst_75 : f32 to vector<1x4x1xf32>
    %173 = arith.mulf %153, %172 : vector<1x4x1xf32>
    %174 = arith.mulf %153, %153 : vector<1x4x1xf32>
    %175 = arith.mulf %174, %153 : vector<1x4x1xf32>
    %cst_76 = arith.constant 4.471500e-02 : f32
    %176 = vector.broadcast %cst_76 : f32 to vector<1x4x1xf32>
    %177 = arith.mulf %175, %176 : vector<1x4x1xf32>
    %178 = arith.addf %153, %177 : vector<1x4x1xf32>
    %cst_77 = arith.constant 0.797884583 : f32
    %179 = vector.broadcast %cst_77 : f32 to vector<1x4x1xf32>
    %180 = arith.mulf %178, %179 : vector<1x4x1xf32>
    %181 = math.tanh %180 : vector<1x4x1xf32>
    %cst_78 = arith.constant 1.000000e+00 : f32
    %182 = vector.broadcast %cst_78 : f32 to vector<1x4x1xf32>
    %183 = arith.addf %181, %182 : vector<1x4x1xf32>
    %184 = arith.mulf %173, %183 : vector<1x4x1xf32>
    %c0_79 = arith.constant 0 : index
    %c0_80 = arith.constant 0 : index
    %c0_81 = arith.constant 0 : index
    %185 = vector.load %arg5[%c0_79, %c0_80, %c0_81] : memref<1x4x1xf32, #tpu.memory_space<vmem>>, vector<1x4x1xf32>
    tpu.vector_store %arg5[%c0_79, %c0_80, %c0_81], %184 {strides = array<i32>} : memref<1x4x1xf32, #tpu.memory_space<vmem>>, vector<1x4x1xf32>,
    return
  }
}

</mosaic_0001>

<bundles_post_ra>
// kernel: squeeze.1
= control target key start
LH: loop header
LB: loop body
LE: loop exit
PB: predicated region body
PF: predicated region fallthrough
CT: control target
= control target key end

     0   :  { %vm7_vm0 = vcmask 23552   ;;  %s37_s8 = smov 3   ;;  %s38_s9 = smov 6   ;;  %vm13_vm1 = vcmask 97352   ;;  %vm19_vm2 = vcmask 72752   ;;  %vm25_vm3 = vcmask 48152   ;;  %s55_s0 = inlined_call_operand.vmem [shape: f32[4,3,1,1], index: 0, kind: input, shape index: {}]   ;;  %s56_s1 = inlined_call_operand.vmem [shape: f32[12], index: 1, kind: output, shape index: {}]  }
   0x1   :  { %v4_v0 = vld [vmem:[%s55_s0] sm:$0xf]  ;;  %s36_s0 = smov 9  }
   0x2   :  { %5 = vst [vmem:[#allocation1] sm:$0xf] %v4_v0 }
   0x9   :  { %v10_v1 = vld [vmem:[#allocation1 + $0x3] sm:$0x1]   ;;  %v22_v2 = vld [vmem:[#allocation1 + $0x1] sm:$0x1]   ;;  %v6_v3 = vld [vmem:[#allocation1] sm:$0x1]  }
   0xa   :  { %11 = vrot.lane.b32.xlu0 %v10_v1, %s36_s0  ;;  %23 = vrot.lane.b32.xlu1 %v22_v2, %s37_s8  ;;  %v16_v4 = vld [vmem:[#allocation1 + $0x2] sm:$0x1]   ;;  %8 = vst.msk [vmem:[#allocation0] sm:$0x1] %vm7_vm0, %v6_v3  }
   0xe   :  { %17 = vrot.lane.b32.xlu0 %v16_v4, %s38_s9 }
  0x7c   :  { %v12_v5 = vpop.permute.xlu0 %11   ;;  %v24_v6 = vpop.permute.xlu1 %23  }
  0x7d   :  { %14 = vst.msk [vmem:[#allocation0] sm:$0x1] %vm13_vm1, %v12_v5  }
  0x80   :  { %v18_v7 = vpop.permute.xlu0 %17  }
  0x81   :  { %20 = vst.msk [vmem:[#allocation0] sm:$0x1] %vm19_vm2, %v18_v7  }
  0x82   :  { %26 = vst.msk [vmem:[#allocation0] sm:$0x1] %vm25_vm3, %v24_v6  }
  0x89   :  { %v30_v8 = vld [vmem:[#allocation0] sm:$0x1] }
  0x8a   :  { %32 = vst [vmem:[%s56_s1] sm:$0x1] %v30_v8 }

// kernel: model_forward.1
= control target key start
LH: loop header
LB: loop body
LE: loop exit
PB: predicated region body
PF: predicated region fallthrough
CT: control target
= control target key end

     0   :  { %11 = vsyncpa [#allocation4], 0  ;;  %s487_s0 = inlined_call_operand.vmem [shape: f32[2,3,256], index: 0, kind: input, shape index: {}]   ;;  %s488_s1 = inlined_call_operand.vmem [shape: f32[12], index: 1, kind: input, shape index: {}]   ;;  %s489_s2 = inlined_call_operand.vmem [shape: f32[1,4,1], index: 2, kind: input, shape index: {}]   ;;  %s490_s3 = inlined_call_operand.vmem [shape: f32[1,4,1], index: 3, kind: input, shape index: {}]   ;;  %s491_s4 = inlined_call_operand.vmem [shape: f32[2,4,256], index: 4, kind: output, shape index: {0}]   ;;  %s492_s5 = inlined_call_operand.vmem [shape: f32[1,4,1], index: 5, kind: output, shape index: {1}]  }
   0x1   :  { %s20_s20 = sshll.u32 %s488_s1, 4  ;;  %s21_s20 = int_to_ptr.vmem [resolvable:$true] %s20_s20 }
   0x2   :  { %s327_s21 = scalar_lea.vmem %s21_s20, 16  ;;  %p332_p1 = scmp.lt.s32.totalorder %s21_s20, %s21_s20 }
   0x3   :  { %p328_p0 = scmp.ne.s32.totalorder %s21_s20, %s327_s21  ;;  %p333_p2 = scmp.lt.s32.totalorder %s327_s21, %s327_s21 }
   0x5   :  { %p334_p3 = por %p333_p2, %p332_p1 }
   0x7   :  { %p335_p4 = pnand %p334_p3, %p328_p0 }
   0x9   :  { %338 = shalt.err (!%p335_p4)
}
   0xa   :  { %s341_s22 = smov [#allocation3]  }
   0xb   :  { %23 = dma.vmem_to_smem %s21_s20, 16, %s341_s22, [#allocation4]  }
   0xc   :  { %339 = dma.done.wait [#allocation4], 16  }
   0xd   :  { %340 = vsyncadd [#allocation4], 4294967280 }
   0xe   :  { %31 = sfence }
   0xf   :  { %s37_s23 = sld [smem:[#allocation3]]  ;;  %s377_s24 = sld [smem:[#allocation3 + $0x1]]  ;;  %v32_v0 = vld [vmem:[%s487_s0] ss:$4 sm:$0x3]  ;;  %v48_v1 = vlaneseq  ;;  %vm158_vm1 = vcmask 1043456  }
  0x10   :  { %s379_s25 = sld [smem:[#allocation3 + $0x2]]  ;;  %s384_s27 = sld [smem:[#allocation3 + $0x3]]  ;;  %v285_v2 = vld [vmem:[%s487_s0 + $0x1] ss:$4 sm:$0x3]  ;;  %vm269_vm2 = vcmask 3072  }
  0x11   :  { %s386_s28 = sld [smem:[#allocation3 + $0x4]]  ;;  %v286_v3 = vld [vmem:[%s487_s0 + $0x2] ss:$4 sm:$0x3]  ;;  %s394_s8 = sld [smem:[#allocation3 + $0x5]]  ;;  %vm407_vm0 = vcmp.lt.s32.totalorder %v48_v1, 256 }
  0x12   :  { %s396_s9 = sld [smem:[#allocation3 + $0x6]]  ;;  %s398_s10 = sld [smem:[#allocation3 + $0x7]]  ;;  %v298_v6 = vld [vmem:[%s487_s0 + $0x8] ss:$4 sm:$0x3] }
  0x13   :  { %s400_s11 = sld [smem:[#allocation3 + $0x8]]  ;;  %s402_s12 = sld [smem:[#allocation3 + $0x9]]  ;;  %v299_v27 = vld [vmem:[%s487_s0 + $0x9] ss:$4 sm:$0x3] }
  0x14   :  { %s404_s13 = sld [smem:[#allocation3 + $0xa]]  ;;  %s411_s14 = sld [smem:[#allocation3 + $0xb]]  ;;  %v300_v28 = vld [vmem:[%s487_s0 + $0xa] ss:$4 sm:$0x3] }
  0x15   :  { %v38_v4 = vstv %s37_s23  ;;  %v41_v8 = vstv %s377_s24 }
  0x16   :  { %v39_v7 = vmul.f32 %v38_v4, %v32_v0  ;;  %v45_v9 = vstv %s379_s25  ;;  %v100_v10 = vmul.f32 %v298_v6, %v38_v4  ;;  %v42_v11 = vmul.f32 %v285_v2, %v41_v8 }
  0x17   :  { %v46_v12 = vmul.f32 %v286_v3, %v45_v9  ;;  %v54_v13 = vstv %s384_s27  ;;  %v57_v14 = vstv %s386_s28  ;;  %v61_v17 = vstv %s394_s8 }
  0x18   :  { %v55_v15 = vmul.f32 %v54_v13, %v32_v0  ;;  %v58_v16 = vmul.f32 %v285_v2, %v57_v14  ;;  %v67_v18 = vstv %s396_s9  ;;  %v43_v19 = vadd.f32 %v42_v11, %v39_v7 }
  0x19   :  { %v62_v20 = vmul.f32 %v286_v3, %v61_v17  ;;  %v68_v21 = vmul.f32 %v67_v18, %v32_v0  ;;  %v70_v22 = vstv %s398_s10  ;;  %v74_v25 = vstv %s400_s11 }
  0x1a   :  { %v59_v23 = vadd.f32 %v58_v16, %v55_v15  ;;  %v71_v24 = vmul.f32 %v285_v2, %v70_v22  ;;  %v80_v26 = vstv %s402_s12  ;;  %v47_v29 = vadd.f32 %v46_v12, %v43_v19 }
  0x1b   :  { %v75_v30 = vmul.f32 %v286_v3, %v74_v25  ;;  %v81_v31 = vmul.f32 %v80_v26, %v32_v0  ;;  %v83_v32 = vstv %s404_s13  ;;  %v87_v36 = vstv %s411_s14 }
  0x1c   :  { %v63_v33 = vadd.f32 %v62_v20, %v59_v23  ;;  %v72_v34 = vadd.f32 %v71_v24, %v68_v21  ;;  %v84_v35 = vmul.f32 %v285_v2, %v83_v32  ;;  %52 = vst.msk [vmem:[#allocation2] ss:$4 sm:$0x3] %vm407_vm0, %v47_v29  ;;  %v88_v37 = vmul.f32 %v286_v3, %v87_v36 }
  0x1d   :  { %v103_v38 = vmul.f32 %v299_v27, %v41_v8  ;;  %v107_v39 = vmul.f32 %v300_v28, %v45_v9  ;;  %v113_v40 = vmul.f32 %v298_v6, %v54_v13  ;;  %v116_v43 = vmul.f32 %v299_v27, %v57_v14 }
  0x1e   :  { %65 = vst.msk [vmem:[#allocation2 + $0x1] ss:$4 sm:$0x3] %vm407_vm0, %v63_v33  ;;  %v76_v41 = vadd.f32 %v75_v30, %v72_v34  ;;  %v85_v42 = vadd.f32 %v84_v35, %v81_v31  ;;  %v120_v44 = vmul.f32 %v300_v28, %v61_v17  ;;  %v126_v46 = vmul.f32 %v298_v6, %v67_v18 }
  0x1f   :  { %v104_v45 = vadd.f32 %v103_v38, %v100_v10  ;;  %v129_v47 = vmul.f32 %v299_v27, %v70_v22  ;;  %v133_v48 = vmul.f32 %v300_v28, %v74_v25  ;;  %v117_v50 = vadd.f32 %v116_v43, %v113_v40  ;;  %v209_v40 = vld [vmem:[%s490_s3] sm:$0xf] }
  0x20   :  { %78 = vst.msk [vmem:[#allocation2 + $0x2] ss:$4 sm:$0x3] %vm407_vm0, %v76_v41  ;;  %v89_v49 = vadd.f32 %v88_v37, %v85_v42  ;;  %v139_v51 = vmul.f32 %v298_v6, %v80_v26  ;;  %v142_v52 = vmul.f32 %v299_v27, %v83_v32  ;;  %v146_v55 = vmul.f32 %v300_v28, %v87_v36  ;;  %v205_v37 = vld [vmem:[%s489_s2] sm:$0xf] }
  0x21   :  { %v108_v53 = vadd.f32 %v107_v39, %v104_v45  ;;  %v130_v54 = vadd.f32 %v129_v47, %v126_v46  ;;  %v121_v56 = vadd.f32 %v120_v44, %v117_v50  ;;  %v342_v7 = vmov 839922192  }
  0x22   :  { %91 = vst.msk [vmem:[#allocation2 + $0x3] ss:$4 sm:$0x3] %vm407_vm0, %v89_v49  ;;  %v143_v57 = vadd.f32 %v142_v52, %v139_v51  ;;  %v173_v8 = vunpack.c.l.s4 %v342_v7  ;;  %v176_v11 = vshrl.u32 %v48_v1, 7  ;;  %v343_v28 = vmov 0  }
  0x23   :  { %110 = vst.msk [vmem:[#allocation2 + $0x8] ss:$4 sm:$0x3] %vm407_vm0, %v108_v53  ;;  %v134_v58 = vadd.f32 %v133_v48, %v130_v54  ;;  %123 = vst.msk [vmem:[#allocation2 + $0x9] ss:$4 sm:$0x3] %vm407_vm0, %v121_v56  ;;  %315 = vset.pattern.permute.xlu0 %v343_v28  ;;  %316 = vset.pattern.permute.xlu1 %v343_v28 }
  0x24   :  { %v147_v59 = vadd.f32 %v146_v55, %v143_v57  ;;  %v174_v10 = vunpack.c.0.s8 %v173_v8 }
  0x25   :  { %136 = vst.msk [vmem:[#allocation2 + $0xa] ss:$4 sm:$0x3] %vm407_vm0, %v134_v58 }
  0x26   :  { %149 = vst.msk [vmem:[#allocation2 + $0xb] ss:$4 sm:$0x3] %vm407_vm0, %v147_v59  ;;  %v177_v14 = vsub.s32 %v174_v10, %v176_v11 }
  0x29   :  { %v449_v60 = vld [vmem:[#allocation2] sm:$0xff] }
  0x2a   :  { %v154_v61 = vcombine.high %v449_v60, %v449_v60  ;;  %v159_v62 = vsel %vm158_vm1, %v449_v60, 0.0 }
  0x2c   :  { %v160_v63 = vsel %vm158_vm1, %v154_v61, 0.0 }
  0x2d   :  { %v161_v0 = vadd.f32 %v160_v63, %v159_v62  ;;  %v456_v2 = vld [vmem:[#allocation2 + $0x8] sm:$0xff] }
  0x2e   :  { %v155_v3 = vcombine.high %v456_v2, %v456_v2  ;;  %v164_v4 = vsel %vm158_vm1, %v456_v2, 0.0 }
  0x2f   :  { %162 = vadd.xlane.f32.xlu0 %v161_v0 }
  0x30   :  { %v165_v5 = vsel %vm158_vm1, %v155_v3, 0.0 }
  0x31   :  { %v166_v6 = vadd.f32 %v165_v5, %v164_v4 }
  0x33   :  { %167 = vadd.xlane.f32.xlu0 %v166_v6 }
  0xbc   :  { %v163_v9 = vpop.xlane.xlu0 %162 }
  0xc0   :  { %v168_v12 = vpop.xlane.xlu0 %167 }
  0xc1   :  { %v169_v13 = vadd.f32 %v168_v12, %v163_v9 }
  0xc3   :  { %v170_v15 = vmul.f32 0.0015432099, %v169_v13 }
  0xc5   :  { %v178_v16 = vrot.slane %v170_v15, %v177_v14  ;;  %v201_v30 = vmul.f32 %v170_v15, %v170_v15 }
  0xc7   :  { %v180_v17 = vsub.f32 %v449_v60, %v178_v16  ;;  %v181_v18 = vsub.f32 %v456_v2, %v178_v16  ;;  %v202_v32 = vmul.f32 136.0, %v201_v30 }
  0xc9   :  { %v182_v19 = vmul.f32 %v180_v17, %v180_v17  ;;  %v183_v20 = vmul.f32 %v181_v18, %v181_v18 }
  0xcb   :  { %v186_v21 = vcombine.high %v182_v19, %v182_v19  ;;  %v187_v22 = vcombine.high %v183_v20, %v183_v20  ;;  %v190_v23 = vsel %vm158_vm1, %v182_v19, 0.0  ;;  %v195_v26 = vsel %vm158_vm1, %v183_v20, 0.0 }
  0xcd   :  { %v191_v24 = vsel %vm158_vm1, %v186_v21, 0.0  ;;  %v196_v1 = vsel %vm158_vm1, %v187_v22, 0.0 }
  0xce   :  { %v192_v25 = vadd.f32 %v191_v24, %v190_v23  ;;  %v197_v27 = vadd.f32 %v196_v1, %v195_v26 }
  0xd0   :  { %193 = vadd.xlane.f32.xlu1 %v192_v25 }
  0xd4   :  { %198 = vadd.xlane.f32.xlu1 %v197_v27 }
 0x15d   :  { %v194_v29 = vpop.xlane.xlu1 %193 }
 0x161   :  { %v199_v31 = vpop.xlane.xlu1 %198 }
 0x162   :  { %v200_v33 = vadd.f32 %v199_v31, %v194_v29 }
 0x164   :  { %v203_v34 = vadd.f32 %v202_v32, %v200_v33 }
 0x166   :  { %v204_v35 = vmul.f32 0.0015432099, %v203_v34 }
 0x168   :  { %v206_v36 = vadd.f32 1e-05, %v204_v35 }
 0x16a   :  { %319 = vrsqrt.f32 %v206_v36 }
 0x174   :  { %v320_v38 = vpop.eup %319 }
 0x175   :  { %v208_v39 = vmul.f32 %v320_v38, %v205_v37 }
 0x177   :  { %214 = vperm.xlu0 %315, %v208_v39   ;;  %v210_v41 = vmul.f32 %v208_v39, %v170_v15 }
 0x179   :  { %v211_v42 = vsub.f32 %v209_v40, %v210_v41 }
 0x17b   :  { %v261_v43 = vmul.f32 %v211_v42, %v211_v42  ;;  %228 = vperm.xlu1 %316, %v211_v42   ;;  %v260_v49 = vmul.f32 0.5, %v211_v42 }
 0x17d   :  { %v262_v44 = vmul.f32 %v261_v43, %v211_v42 }
 0x17f   :  { %v263_v45 = vmul.f32 0.044715, %v262_v44 }
 0x181   :  { %v264_v46 = vadd.f32 %v263_v45, %v211_v42 }
 0x183   :  { %v265_v47 = vmul.f32 0.7978846, %v264_v46 }
 0x185   :  { %321 = vtanh.f32 %v265_v47 }
 0x18f   :  { %v322_v48 = vpop.eup %321 }
 0x190   :  { %v267_v50 = vadd.f32 1.0, %v322_v48 }
 0x192   :  { %v268_v51 = vmul.f32 %v267_v50, %v260_v49 }
 0x194   :  { %270 = vst.msk [vmem:[%s492_s5] sm:$0xf] %vm269_vm2, %v268_v51 }
 0x1f6   :  { %v215_v52 = vpop.permute.xlu0 %214 }
 0x1f7   :  { %v222_v53 = vrot.slane %v215_v52, %v177_v14 }
 0x1f9   :  { %v224_v55 = vmul.f32 %v222_v53, %v449_v60  ;;  %v225_v56 = vmul.f32 %v222_v53, %v456_v2 }
 0x1fa   :  { %v229_v54 = vpop.permute.xlu1 %228 }
 0x1fb   :  { %v236_v57 = vrot.slane %v229_v54, %v177_v14 }
 0x1fd   :  { %v238_v58 = vadd.f32 %v236_v57, %v224_v55  ;;  %v239_v59 = vadd.f32 %v236_v57, %v225_v56 }
 0x1ff   :  { %v242_v61 = vmul.f32 %v238_v58, %v238_v58  ;;  %v243_v62 = vmul.f32 %v239_v59, %v239_v59  ;;  %v240_v60 = vmul.f32 0.5, %v238_v58  ;;  %v241_v2 = vmul.f32 0.5, %v239_v59 }
 0x201   :  { %v244_v63 = vmul.f32 %v242_v61, %v238_v58  ;;  %v245_v0 = vmul.f32 %v243_v62, %v239_v59 }
 0x203   :  { %v246_v3 = vmul.f32 0.044715, %v244_v63  ;;  %v247_v4 = vmul.f32 0.044715, %v245_v0 }
 0x205   :  { %v248_v5 = vadd.f32 %v246_v3, %v238_v58  ;;  %v249_v6 = vadd.f32 %v247_v4, %v239_v59 }
 0x207   :  { %v250_v7 = vmul.f32 0.7978846, %v248_v5  ;;  %v251_v8 = vmul.f32 0.7978846, %v249_v6 }
 0x209   :  { %323 = vtanh.f32 %v250_v7 }
 0x20a   :  { %325 = vtanh.f32 %v251_v8 }
 0x213   :  { %v324_v9 = vpop.eup %323 }
 0x214   :  { %v326_v10 = vpop.eup %325  ;;  %v254_v11 = vadd.f32 1.0, %v324_v9 }
 0x215   :  { %v255_v12 = vadd.f32 1.0, %v326_v10 }
 0x216   :  { %v256_v13 = vmul.f32 %v254_v11, %v240_v60 }
 0x217   :  { %v257_v14 = vmul.f32 %v255_v12, %v241_v2 }
 0x218   :  { %258 = vst [vmem:[%s491_s4] sm:$0xff] %v256_v13 }
 0x219   :  { %259 = vst [vmem:[%s491_s4 + $0x8] sm:$0xff] %v257_v14 }
 0x21a   :  { %279 = vsyncpa [#allocation4], 1 }

</bundles_post_ra>
